<compile_context>
chip_gen: v7x
topology: tpu7x:2x2x1
jax: 0.10.0
libtpu: 0.0.40
codegen_flags: <defaults>
</compile_context>

<pallas_src>
import math

import jax
import jax.numpy as jnp
from jax import lax
from jax.experimental import pallas as pl
from jax.experimental.pallas import tpu as pltpu


_MIN_KERNEL_ELEMS = 32 * 1024    # below this, plain JAX beats grid/pipeline plumbing
_MIN_ROWS_PER_CORE = 64          # minimum rows per parallel chunk worth splitting across cores


def _cdiv(a, b):
    return -(-a // b)


def _make_content_loss_kernel(rows_total, blocks_per_chunk, block_rows, lane):
    nsub = block_rows // 8

    def kernel(x_ref, t_ref, acc_ref):
        # Zero the resident (8, lane) accumulator at the first step of the inner ("arbitrary") axis.
        @pl.when(pl.program_id(1) == 0)
        def _():
            acc_ref[...] = jnp.zeros_like(acc_ref)

        # Logical (unclamped) row offset of this block in the (rows_total, lane) view.
        block_idx = pl.program_id(0) * blocks_per_chunk + pl.program_id(1)
        row_start = block_idx * block_rows

        d = x_ref[...].astype(jnp.float32) - t_ref[...].astype(jnp.float32)
        d2 = d * d

        # Hot path: block fully in bounds -> pure VPU reduce into the (8, lane) accumulator.
        @pl.when(row_start + block_rows <= rows_total)
        def _():
            acc_ref[...] += jnp.sum(d2.reshape(nsub, 8, lane), axis=0)

        # Edge path: mask rows at/after rows_total (select, so garbage bits never propagate).
        @pl.when(row_start + block_rows > rows_total)
        def _():
            row_ids = row_start + lax.broadcasted_iota(jnp.int32, (block_rows, 1), 0)
            d2m = jnp.where(row_ids < rows_total, d2, 0.0)
            acc_ref[...] += jnp.sum(d2m.reshape(nsub, 8, lane), axis=0)

    return kernel


def content_loss_forward(x, target, *, target_block_bytes=4 << 20):
    """Returns (input, mse_loss).  ContentLoss.forward returns `input` unchanged and stores
    self.loss = F.mse_loss(input, target) (reduction='mean'); JAX is functional, so the loss
    is returned explicitly instead of being stored on the module."""
    assert x.shape == target.shape, "input/target shape mismatch"
    n_elem = math.prod(x.shape)

    # Fast path: tiny feature maps, or element counts with no lane-dense (multiple-of-128)
    # 2-D view.  XLA's fused subtract/square/mean reads each array exactly once (same HBM
    # traffic as the kernel, and avoids any pad copies).
    if n_elem < _MIN_KERNEL_ELEMS or n_elem % 128 != 0:
        diff = x.astype(jnp.float32) - target.astype(jnp.float32)
        return x, jnp.mean(diff * diff)

    itemsize = jnp.dtype(x.dtype).itemsize

    # Lane-dense 2-D view (zero-copy reshape of contiguous arrays): (rows, lane).
    lane = 512 if n_elem % 512 == 0 else (256 if n_elem % 256 == 0 else 128)
    rows = n_elem // lane
    x2 = x.reshape(rows, lane)
    t2 = target.reshape(rows, lane)

    # Block sizing: ~target_block_bytes per input stream, rows a multiple of 8 and never
    # exceeding the array's row count (edge raggedness is handled by the in-kernel mask).
    max_block_rows = max(8, (target_block_bytes // (lane * itemsize)) // 8 * 8)

    # Megacore split (harmless on single-TC chips): two parallel chunks whenever each chunk
    # gets at least _MIN_ROWS_PER_CORE rows; block_rows is rebalanced per chunk.
    n_par = 2 if rows >= 2 * _MIN_ROWS_PER_CORE else 1
    rows_per_chunk = _cdiv(rows, n_par)
    block_rows = min(max_block_rows, max(8, (rows_per_chunk // 8) * 8))
    total_blocks = _cdiv(rows, block_rows)
    blocks_per_chunk = _cdiv(total_blocks, n_par)
    grid = (n_par, blocks_per_chunk)

    # Input index map: contiguous run of blocks per parallel chunk.  If the grid overshoots the
    # real block count (odd total with n_par=2), clamp the DMA to the last real block; the
    # kernel's row mask (computed from the *logical* block index) zeroes its contribution.
    if n_par * blocks_per_chunk > total_blocks:
        in_map = lambda c, i: (jnp.minimum(c * blocks_per_chunk + i, total_blocks - 1), 0)
    else:
        in_map = lambda c, i: (c * blocks_per_chunk + i, 0)
    out_map = lambda c, i: (c, 0)   # (8, lane) accumulator, resident along the inner axis

    kernel = _make_content_loss_kernel(rows, blocks_per_chunk, block_rows, lane)

    partials = pl.pallas_call(
        kernel,
        out_shape=jax.ShapeDtypeStruct((n_par * 8, lane), jnp.float32),
        grid_spec=pl.GridSpec(
            grid=grid,
            in_specs=[
                pl.BlockSpec((block_rows, lane), in_map),
                pl.BlockSpec((block_rows, lane), in_map),
            ],
            out_specs=pl.BlockSpec((8, lane), out_map),
        ),
        compiler_params=pltpu.CompilerParams(
            # TODO(synk): on v7x, verify in a trace that the leading "parallel" axis actually
            # shards across both TensorCores; switch to pltpu.CORE_PARALLEL if it does not.
            dimension_semantics=("parallel", "arbitrary"),
            vmem_limit_bytes=48 << 20,
        ),
        cost_estimate=pl.CostEstimate(
            flops=3 * n_elem,
            transcendentals=0,
            bytes_accessed=2 * n_elem * itemsize,
        ),
    )(x2, t2)

    loss = jnp.sum(partials) / jnp.float32(n_elem)
    # ContentLoss.forward returns its input unchanged — no kernel work or HBM traffic for that.
    return x, loss


if __name__ == "__main__":
    key = jax.random.PRNGKey(0)
    keys = jax.random.split(key, 12)

    def ref_mse(a, b):
        return jnp.mean(jnp.square(a.astype(jnp.float32) - b.astype(jnp.float32)))

    def check(x, t, **kw):
        out, loss = content_loss_forward(x, t, **kw)
        out, loss = jax.block_until_ready((out, loss))
        assert out.shape == x.shape and bool(jnp.all(out == x)), "passthrough mismatch"
        ref = ref_mse(x, t)
        assert jnp.allclose(loss, ref, rtol=1e-4, atol=1e-6), (loss, ref)

    # 1) Tiny feature map (typical ContentLoss input) -> plain-JAX fast path.
    x = jax.random.normal(keys[0], (2, 4, 16, 16), dtype=jnp.float32)
    t = jax.random.normal(keys[1], (2, 4, 16, 16), dtype=jnp.float32)
    check(x, t)

    # 2) Kernel path, aligned rows, megacore split (rows=256, grid=(2, 1)).
    x = jax.random.normal(keys[2], (2, 16, 64, 64), dtype=jnp.float32)
    t = jax.random.normal(keys[3], (2, 16, 64, 64), dtype=jnp.float32)
    check(x, t)

    # 3) Same data, small blocks -> multi-step accumulation along the "arbitrary" axis (grid=(2, 4)).
    check(x, t, target_block_bytes=64 << 10)

    # 4) Kernel path with a partial edge block (rows=90 -> in-kernel row mask on the last block).
    xr = jax.random.normal(keys[4], (3, 5, 24, 128), dtype=jnp.float32)
    tr = jax.random.normal(keys[5], (3, 5, 24, 128), dtype=jnp.float32)
    check(xr, tr)

    # 5) Odd total block count with n_par=2 -> clamped index map + fully-masked trailing block.
    xo = jax.random.normal(keys[6], (4, 10, 32, 64), dtype=jnp.float32)
    to = jax.random.normal(keys[7], (4, 10, 32, 64), dtype=jnp.float32)
    check(xo, to, target_block_bytes=64 << 10)

    # 6) bf16 inputs stream in native dtype and are cast to f32 in-kernel.
    xb = jax.random.normal(keys[8], (2, 16, 64, 64), dtype=jnp.bfloat16)
    tb = jax.random.normal(keys[9], (2, 16, 64, 64), dtype=jnp.bfloat16)
    check(xb, tb)

    # 7) Ragged element count (not a multiple of 128) -> plain-JAX fallback, no pad copies.
    xg = jax.random.normal(keys[10], (5, 7, 41, 37), dtype=jnp.float32)
    tg = jax.random.normal(keys[11], (5, 7, 41, 37), dtype=jnp.float32)
    check(xg, tg)

    print("KERNEL_OK")
</pallas_src>

<mosaic_0001>
module attributes {stable_mosaic.version = 11 : i64} {
  func.func @kernel(%arg0: i32, %arg1: i32, %arg2: memref<128x512xf32, #tpu.memory_space<vmem>>, %arg3: memref<128x512xf32, #tpu.memory_space<vmem>>, %arg4: memref<8x512xf32, #tpu.memory_space<vmem>>) attributes {dimension_semantics = [#tpu.dimension_semantics<parallel>, #tpu.dimension_semantics<arbitrary>], iteration_bounds = array<i64: 2, 1>, scalar_prefetch = 0 : i64, scratch_operands = 0 : i64, tpu.core_type = #tpu.core_type<tc>, window_params = [{transform_indices = @transform_0, window_bounds = array<i64: 128, 512>}, {transform_indices = @transform_1, window_bounds = array<i64: 128, 512>}, {transform_indices = @transform_2, window_bounds = array<i64: 8, 512>}]} {
    %c0_i32 = arith.constant 0 : i32
    %0 = arith.cmpi eq, %arg1, %c0_i32 : i32
    %1 = arith.extui %0 : i1 to i32
    %c0_i32_0 = arith.constant 0 : i32
    %2 = arith.cmpi ne, %1, %c0_i32_0 : i32
    scf.if %2 {
      %cst = arith.constant 0.000000e+00 : f32
      %18 = vector.broadcast %cst : f32 to vector<8x512xf32>
      %c0_9 = arith.constant 0 : index
      %c0_10 = arith.constant 0 : index
      %19 = vector.load %arg4[%c0_9, %c0_10] : memref<8x512xf32, #tpu.memory_space<vmem>>, vector<8x512xf32>
      tpu.vector_store %arg4[%c0_9, %c0_10], %18 {strides = array<i32>} : memref<8x512xf32, #tpu.memory_space<vmem>>, vector<8x512xf32>,
    } else {
    }
    %c1_i32 = arith.constant 1 : i32
    %3 = arith.muli %arg0, %c1_i32 : i32
    %4 = arith.addi %3, %arg1 : i32
    %c128_i32 = arith.constant 128 : i32
    %5 = arith.muli %4, %c128_i32 : i32
    %c0 = arith.constant 0 : index
    %c0_1 = arith.constant 0 : index
    %6 = vector.load %arg2[%c0, %c0_1] : memref<128x512xf32, #tpu.memory_space<vmem>>, vector<128x512xf32>
    %c0_2 = arith.constant 0 : index
    %c0_3 = arith.constant 0 : index
    %7 = vector.load %arg3[%c0_2, %c0_3] : memref<128x512xf32, #tpu.memory_space<vmem>>, vector<128x512xf32>
    %8 = arith.subf %6, %7 : vector<128x512xf32>
    %9 = arith.mulf %8, %8 : vector<128x512xf32>
    %c128_i32_4 = arith.constant 128 : i32
    %10 = arith.addi %5, %c128_i32_4 : i32
    %c256_i32 = arith.constant 256 : i32
    %11 = arith.cmpi sle, %10, %c256_i32 : i32
    %12 = arith.extui %11 : i1 to i32
    %c0_i32_5 = arith.constant 0 : i32
    %13 = arith.cmpi ne, %12, %c0_i32_5 : i32
    scf.if %13 {
      %c0_9 = arith.constant 0 : index
      %c0_10 = arith.constant 0 : index
      %18 = vector.load %arg4[%c0_9, %c0_10] : memref<8x512xf32, #tpu.memory_space<vmem>>, vector<8x512xf32>
      %19 = vector.shape_cast %9 : vector<128x512xf32> to vector<16x8x512xf32>
      %cst = arith.constant dense<0.000000e+00> : vector<8x512xf32>
      %20 = vector.multi_reduction <add>, %19, %cst [0] : vector<16x8x512xf32> to vector<8x512xf32>
      %21 = arith.addf %18, %20 : vector<8x512xf32>
      %c0_11 = arith.constant 0 : index
      %c0_12 = arith.constant 0 : index
      %22 = vector.load %arg4[%c0_11, %c0_12] : memref<8x512xf32, #tpu.memory_space<vmem>>, vector<8x512xf32>
      tpu.vector_store %arg4[%c0_11, %c0_12], %21 {strides = array<i32>} : memref<8x512xf32, #tpu.memory_space<vmem>>, vector<8x512xf32>,
    } else {
    }
    %c128_i32_6 = arith.constant 128 : i32
    %14 = arith.addi %5, %c128_i32_6 : i32
    %c256_i32_7 = arith.constant 256 : i32
    %15 = arith.cmpi sgt, %14, %c256_i32_7 : i32
    %16 = arith.extui %15 : i1 to i32
    %c0_i32_8 = arith.constant 0 : i32
    %17 = arith.cmpi ne, %16, %c0_i32_8 : i32
    scf.if %17 {
      %18 = tpu.iota {dimensions = array<i32: 0>} : vector<128x1xi32>
      %19 = vector.broadcast %5 : i32 to vector<128x1xi32>
      %20 = arith.addi %19, %18 : vector<128x1xi32>
      %c256_i32_9 = arith.constant 256 : i32
      %21 = vector.broadcast %c256_i32_9 : i32 to vector<128x1xi32>
      %22 = arith.cmpi slt, %20, %21 : vector<128x1xi32>
      %cst = arith.constant 0.000000e+00 : f32
      %23 = vector.shape_cast %22 : vector<128x1xi1> to vector<128x1xi1>
      %24 = vector.broadcast %23 : vector<128x1xi1> to vector<128x512xi1>
      %25 = vector.broadcast %cst : f32 to vector<128x512xf32>
      %26 = arith.select %24, %9, %25 : vector<128x512xi1>, vector<128x512xf32>
      %c0_10 = arith.constant 0 : index
      %c0_11 = arith.constant 0 : index
      %27 = vector.load %arg4[%c0_10, %c0_11] : memref<8x512xf32, #tpu.memory_space<vmem>>, vector<8x512xf32>
      %28 = vector.shape_cast %26 : vector<128x512xf32> to vector<16x8x512xf32>
      %cst_12 = arith.constant dense<0.000000e+00> : vector<8x512xf32>
      %29 = vector.multi_reduction <add>, %28, %cst_12 [0] : vector<16x8x512xf32> to vector<8x512xf32>
      %30 = arith.addf %27, %29 : vector<8x512xf32>
      %c0_13 = arith.constant 0 : index
      %c0_14 = arith.constant 0 : index
      %31 = vector.load %arg4[%c0_13, %c0_14] : memref<8x512xf32, #tpu.memory_space<vmem>>, vector<8x512xf32>
      tpu.vector_store %arg4[%c0_13, %c0_14], %30 {strides = array<i32>} : memref<8x512xf32, #tpu.memory_space<vmem>>, vector<8x512xf32>,
    } else {
    }
    return
  }
  func.func @transform_0(%arg0: i32, %arg1: i32) -> (i32, i32) {
    %c1_i32 = arith.constant 1 : i32
    %0 = arith.muli %arg0, %c1_i32 : i32
    %1 = arith.addi %0, %arg1 : i32
    %c0_i32 = arith.constant 0 : i32
    %c0_i32_0 = arith.constant 0 : i32
    return %1, %c0_i32 : i32, i32
  }
  func.func @transform_1(%arg0: i32, %arg1: i32) -> (i32, i32) {
    %c1_i32 = arith.constant 1 : i32
    %0 = arith.muli %arg0, %c1_i32 : i32
    %1 = arith.addi %0, %arg1 : i32
    %c0_i32 = arith.constant 0 : i32
    %c0_i32_0 = arith.constant 0 : i32
    return %1, %c0_i32 : i32, i32
  }
  func.func @transform_2(%arg0: i32, %arg1: i32) -> (i32, i32) {
    %c0_i32 = arith.constant 0 : i32
    %c0_i32_0 = arith.constant 0 : i32
    return %arg0, %c0_i32 : i32, i32
  }
}

</mosaic_0001>

<bundles_post_ra>
// kernel: tpu_custom_call.1
= control target key start
LH: loop header
LB: loop body
LE: loop exit
PB: predicated region body
PF: predicated region fallthrough
CT: control target
= control target key end

     0   :  { %7 = vsyncpa [#allocation3], 0  ;;  %s2162_s0 = inlined_call_operand.hbm [shape: f32[256,512], index: 0, kind: input, shape index: {}]   ;;  %s2163_s1 = inlined_call_operand.hbm [shape: f32[256,512], index: 1, kind: input, shape index: {}]   ;;  %s2164_s2 = inlined_call_operand.hbm [shape: f32[16,512], index: 2, kind: output, shape index: {}]  }
   0x1   :  { %9 = vsyncpa [#allocation3 + $0x1], 0 }
   0x2   :  { %10 = vsyncpa [#allocation6], 0 }
   0x3   :  { %12 = vsyncpa [#allocation6 + $0x1], 0 }
   0x4   :  { %13 = vsyncpa [#allocation4], 0 }
   0x5   :  { %15 = vsyncpa [#allocation4 + $0x1], 0  ;;  %s1177_s9 = smov 0   ;;  %s1179_s10 = smov 0  }
   0x6   :  { %s1181_s11 = smov 0   ;;  %s1183_s12 = smov 0  }
   0x7   :  { %s1185_s13 = smov 0   ;;  %s1187_s14 = smov 0  }
   0x8 LB: > { %s909_s15 = sadd.s32 4294967295, %s1154_s14   ;;  %s910_s16 = sadd.s32 4294967294, %s1154_s14   ;;  %s1154_s14 = sphi %s1187_s14, %s21_s14   ;;  %s1150_s13 = sphi %s1185_s13, %s2283_s13   ;;  %s1146_s12 = sphi %s1183_s12, %s2282_s12   ;;  %s1142_s11 = sphi %s1181_s11, %s2281_s11   ;;  %s1138_s10 = sphi %s1179_s10, %s2280_s10   ;;  %s1134_s9 = sphi %s1177_s9, %s2279_s9  }
   0x9   : > { %s33_s17 = sadd.s32 1, %s1150_s13  ;;  %s42_s18 = sadd.s32 1, %s1142_s11 }
   0xa   : > { %p35_p0 = scmp.ge.s32.totalorder %s33_s17, 2  ;;  %p49_p1 = scmp.ne.s32.totalorder %s1142_s11, %s1138_s10 }
   0xb   : > { %p50_p2 = scmp.eq.s32.totalorder %s1154_s14, 0  ;;  %p55_p3 = scmp.ne.s32.totalorder %s1138_s10, %s1134_s9 }
   0xc   : > { %s2285_s17 = smov (%p35_p0, %s33_s17), 0  ;;  %p56_p5 = scmp.eq.s32.totalorder %s909_s15, 0 }
   0xd   : > { %p1218_p4 = por %p50_p2, %p49_p1  ;;  %s39_s20 = ssub.s32 %s1150_s13, %s2285_s17 }
   0xe   : > { %p107_p6 = scmp.eq.s32.totalorder %s909_s15, 1  ;;  %p40_p7 = scmp.eq.s32.totalorder %s39_s20, 0 }
   0xf   : > { %p1224_p8 = por %p56_p5, %p55_p3  ;;  %p113_p10 = scmp.eq.s32.totalorder %s910_s16, 1 }
  0x10   : > { %p1228_p9 = por %p107_p6, %p49_p1  ;;  %p955_p13 = scmp.lt.s32.totalorder %s1154_s14, 2 }
  0x11   : > { %s2175_s21 = scalar_select %p1224_p8, 1, 0 }
  0x12   : > { %s2176_s22 = scalar_select %p1228_p9, 1, 0 }
  0x13   : > { %s1233_s23 = scalar_select %p40_p7, %s1142_s11, %s42_s18  }
  0x14   : > { %p1235_p11 = por %p113_p10, %p55_p3  ;;  %s1242_s25 = sand.u32 1, %s1142_s11  }
  0x15   : > { %s913_s26 = sshll.u32 %s1242_s25, 9  ;;  %s934_s27 = sshll.u32 %s1150_s13, 13 }
  0x16   : > { %s2177_s24 = scalar_select %p1235_p11, 1, 0 }
  0x17   : > { %s1251_s30 = scalar_lea.hbm %s2162_s0, %s934_s27  ;;  %s137_s3 = scalar_lea.vmem [#allocation2], %s913_s26 }
  0x18   : > { %s146_s4 = sshll.u32 %s137_s3, 4  ;;  %p1259_p0 = pnand %p955_p13, %p1218_p4  ;;  %s1255_s4 = int_to_ptr.vmem [resolvable:$true] %s146_s4 }
  0x19   : > { %s134_s6 = scalar_lea.sflag [#allocation3], %s1242_s25  ;;  %s1008_s7 = scalar_lea.hbm %s1251_s30, 8192 }
  0x1a   : > { %p1009_p2 = scmp.ne.s32.totalorder %s1251_s30, %s1008_s7  ;;  %p1010_p3 = pneg %p1259_p0 }
  0x1b   : > { %s1013_s16 = scalar_lea.hbm %s2162_s0, 16384  ;;  %p1014_p4 = scmp.lt.u32.totalorder %s1251_s30, %s2162_s0 }
  0x1c   : > { %p1011_p5 = pnand %p1010_p3, %p1009_p2  ;;  %p1015_p7 = scmp.lt.u32.totalorder %s1013_s16, %s1008_s7 }
  0x1d   : > { %p1017_p13 = scmp.lt.u32.totalorder %s1008_s7, %s1251_s30 }
  0x1e   : > { %p1012_p6 = pneg %p1011_p5  ;;  %p1016_p10 = por %p1015_p7, %p1014_p4 }
  0x20   : > { %p1018_p12 = por %p1017_p13, %p1016_p10 }
  0x22   : > { %p1019_p1 = pnand %p1018_p12, %p1012_p6 }
  0x24   : > { %1022 = shalt.err (!%p1019_p1)
}
  0x25   : > { %s1023_s20 = scalar_lea.vmem %s1255_s4, 8192  ;;  %s1156_s28 = smov [#allocation2]  }
  0x26   : > { %p1024_p2 = scmp.ne.s32.totalorder %s1255_s4, %s1023_s20  ;;  %s1028_s29 = sshll.u32 %s1156_s28, 4  ;;  %s1029_s29 = int_to_ptr.vmem [resolvable:$false] %s1028_s29 }
  0x27   : > { %s1030_s3 = scalar_lea.vmem %s1029_s29, 16384  ;;  %p1031_p9 = scmp.lt.s32.totalorder %s1255_s4, %s1029_s29 }
  0x28   : > { %p1026_p5 = pnand %p1024_p2, %p1010_p3  ;;  %p1032_p4 = scmp.lt.s32.totalorder %s1030_s3, %s1023_s20 }
  0x2a   : > { %p1027_p11 = pneg %p1026_p5  ;;  %p1033_p7 = por %p1032_p4, %p1031_p9 }
  0x2c   : > { %p1034_p10 = pnand %p1033_p7, %p1027_p11 }
  0x2e   : > { %1037 = shalt.err (!%p1034_p10)
}
  0x2f   : > { %s1157_s7 = smov 512   ;;  %s1158_s8 = smov 32  }
  0x30   : > { %947 = dma.hbm_to_vmem [thread:$0]  (!%p1259_p0), %s1251_s30, 8192, %s1255_s4, %s134_s6, %s1157_s7, %s1157_s7, %s1158_s8  }
  0x31   : > { %p177_p9 = scmp.lt.s32.totalorder %s1154_s14, 3  ;;  %s1301_s18 = scalar_lea.hbm %s2163_s1, %s934_s27 }
  0x32   : > { %p2179_p11 = scmp.ge.s32.totalorder %s1154_s14, 1  ;;  %s160_s20 = scalar_lea.vmem [#allocation5], %s913_s26 }
  0x33   : > { %s169_s28 = sshll.u32 %s160_s20, 4  ;;  %s157_s30 = scalar_lea.sflag [#allocation6], %s1242_s25  ;;  %s1311_s28 = int_to_ptr.vmem [resolvable:$true] %s169_s28 }
  0x34   : > { %p1305_p12 = pnand %p2179_p11, %p177_p9  ;;  %s1038_s4 = scalar_lea.hbm %s1301_s18, 8192 }
  0x35   : > { %p1039_p1 = scmp.ne.s32.totalorder %s1301_s18, %s1038_s4  ;;  %s1043_s29 = scalar_lea.hbm %s2163_s1, 16384 }
  0x36   : > { %p1044_p2 = scmp.lt.u32.totalorder %s1301_s18, %s2163_s1  ;;  %p1045_p5 = scmp.lt.u32.totalorder %s1043_s29, %s1038_s4 }
  0x37   : > { %p1041_p6 = pnand %p1039_p1, %p1010_p3  ;;  %p1047_p7 = scmp.lt.u32.totalorder %s1038_s4, %s1301_s18 }
  0x38   : > { %p1046_p4 = por %p1045_p5, %p1044_p2 }
  0x39   : > { %p1042_p13 = pneg %p1041_p6 }
  0x3a   : > { %p1048_p10 = por %p1047_p7, %p1046_p4 }
  0x3c   : > { %p1049_p9 = pnand %p1048_p10, %p1042_p13 }
  0x3e   : > { %1052 = shalt.err (!%p1049_p9)
}
  0x3f   : > { %s1053_s26 = scalar_lea.vmem %s1311_s28, 8192  ;;  %s1159_s16 = smov [#allocation5]  }
  0x40   : > { %p1054_p11 = scmp.ne.s32.totalorder %s1311_s28, %s1053_s26  ;;  %s1058_s20 = sshll.u32 %s1159_s16, 4  ;;  %s1059_s20 = int_to_ptr.vmem [resolvable:$false] %s1058_s20 }
  0x41   : > { %s1060_s27 = scalar_lea.vmem %s1059_s20, 16384  ;;  %p1061_p8 = scmp.lt.s32.totalorder %s1311_s28, %s1059_s20 }
  0x42   : > { %p1056_p1 = pnand %p1054_p11, %p1010_p3  ;;  %p1062_p2 = scmp.lt.s32.totalorder %s1060_s27, %s1053_s26 }
  0x44   : > { %p1057_p6 = pneg %p1056_p1  ;;  %p1063_p5 = por %p1062_p2, %p1061_p8 }
  0x46   : > { %p1064_p4 = pnand %p1063_p5, %p1057_p6 }
  0x48   : > { %1067 = shalt.err (!%p1064_p4)
}
  0x49   : > { %950 = dma.hbm_to_vmem [thread:$0]  (!%p1259_p0), %s1301_s18, 8192, %s1311_s28, %s157_s30, %s1157_s7, %s1157_s7, %s1158_s8  }
  0x4a   : > { %181 = sbr.rel (%p1305_p12) target bundleno = 263 (0x107), region = 28 }
  0x51   : > { %s1345_s4 = sand.u32 1, %s1138_s10   ;;  %p2181_p8 = scmp.ne.s32.totalorder %s2175_s21, 0 }
  0x52   : > { %s922_s6 = sshll.u32 %s1345_s4, 9  ;;  %s184_s29 = scalar_lea.sflag [#allocation3], %s1345_s4 }
  0x53   : > { %s1349_s5 = scalar_lea.vmem [#allocation2], %s922_s6 }
  0x54   : > { %1121 = dma.done.wait (%p2181_p8), %s184_s29, 8192  }
  0x55   : > { %1123 = vsyncadd (%p2181_p8), %s184_s29, 4294959104  ;;  %s193_s25 = scalar_lea.sflag [#allocation6], %s1345_s4  ;;  %s1356_s7 = scalar_lea.vmem [#allocation5], %s922_s6 }
  0x56   : > { %1125 = dma.done.wait (%p2181_p8), %s193_s25, 8192  }
  0x57   : > { %1127 = vsyncadd (%p2181_p8), %s193_s25, 4294959104  ;;  %s924_s8 = sshll.u32 %s1345_s4, 5  ;;  %s925_s18 = sshll.u32 %s1146_s12, 7  ;;  %v1160_v0 = vmov 0.0   ;;  %v236_v1 = vld [vmem:[%s1349_s5] sm:$0xff]  ;;  %v237_v2 = vld [vmem:[%s1349_s5 + $0x8] sm:$0xff] }
  0x58   : > { %s1366_s19 = sadd.s32 128, %s925_s18  ;;  %s1368_s21 = scalar_lea.vmem [#allocation7], %s924_s8  ;;  %v238_v3 = vld [vmem:[%s1349_s5 + $0x10] sm:$0xff]  ;;  %v239_v4 = vld [vmem:[%s1349_s5 + $0x18] sm:$0xff]  ;;  %v240_v5 = vld [vmem:[%s1349_s5 + $0x20] sm:$0xff] }
  0x59   : > { %230 = vst [vmem:[%s1368_s21] sm:$0xff] %v1160_v0  ;;  %231 = vst [vmem:[%s1368_s21 + $0x8] sm:$0xff] %v1160_v0  ;;  %v241_v6 = vld [vmem:[%s1349_s5 + $0x28] sm:$0xff]  ;;  %v242_v7 = vld [vmem:[%s1349_s5 + $0x30] sm:$0xff]  ;;  %p926_p0 = scmp.gt.s32.totalorder %s1366_s19, 256 }
  0x5a   : > { %232 = vst [vmem:[%s1368_s21 + $0x10] sm:$0xff] %v1160_v0  ;;  %233 = vst [vmem:[%s1368_s21 + $0x18] sm:$0xff] %v1160_v0  ;;  %v243_v8 = vld [vmem:[%s1349_s5 + $0x38] sm:$0xff]  ;;  %v244_v9 = vld [vmem:[%s1349_s5 + $0x40] sm:$0xff] }
  0x5b   : > { %v245_v10 = vld [vmem:[%s1349_s5 + $0x48] sm:$0xff]  ;;  %v246_v11 = vld [vmem:[%s1349_s5 + $0x50] sm:$0xff]  ;;  %v247_v12 = vld [vmem:[%s1349_s5 + $0x58] sm:$0xff] }
  0x5c   : > { %v248_v13 = vld [vmem:[%s1349_s5 + $0x60] sm:$0xff]  ;;  %v249_v14 = vld [vmem:[%s1349_s5 + $0x68] sm:$0xff]  ;;  %v250_v17 = vld [vmem:[%s1349_s5 + $0x70] sm:$0xff] }
  0x5d   : > { %v300_v15 = vld [vmem:[%s1356_s7] sm:$0xff]  ;;  %v301_v16 = vld [vmem:[%s1356_s7 + $0x8] sm:$0xff]  ;;  %v251_v18 = vld [vmem:[%s1349_s5 + $0x78] sm:$0xff] }
  0x5e   : > { %v252_v19 = vld [vmem:[%s1349_s5 + $0x80] sm:$0xff]  ;;  %v302_v20 = vld [vmem:[%s1356_s7 + $0x10] sm:$0xff]  ;;  %v303_v21 = vld [vmem:[%s1356_s7 + $0x18] sm:$0xff]  ;;  %v364_v23 = vsub.f32 %v236_v1, %v300_v15  ;;  %v365_v24 = vsub.f32 %v237_v2, %v301_v16 }
  0x5f   : > { %v304_v22 = vld [vmem:[%s1356_s7 + $0x20] sm:$0xff]  ;;  %v253_v25 = vld [vmem:[%s1349_s5 + $0x88] sm:$0xff]  ;;  %v254_v26 = vld [vmem:[%s1349_s5 + $0x90] sm:$0xff]  ;;  %v366_v31 = vsub.f32 %v238_v3, %v302_v20  ;;  %v367_v32 = vsub.f32 %v239_v4, %v303_v21 }
  0x60   : > { %v255_v27 = vld [vmem:[%s1349_s5 + $0x98] sm:$0xff]  ;;  %v305_v28 = vld [vmem:[%s1356_s7 + $0x28] sm:$0xff]  ;;  %v306_v29 = vld [vmem:[%s1356_s7 + $0x30] sm:$0xff]  ;;  %v368_v33 = vsub.f32 %v240_v5, %v304_v22  ;;  %v1410_v43 = vmul.f32 %v364_v23, %v364_v23  ;;  %v1424_v53 = vmul.f32 %v365_v24, %v365_v24 }
  0x61   : > { %v307_v30 = vld [vmem:[%s1356_s7 + $0x38] sm:$0xff]  ;;  %v256_v34 = vld [vmem:[%s1349_s5 + $0xa0] sm:$0xff]  ;;  %v257_v35 = vld [vmem:[%s1349_s5 + $0xa8] sm:$0xff]  ;;  %v369_v40 = vsub.f32 %v241_v6, %v305_v28  ;;  %v370_v41 = vsub.f32 %v242_v7, %v306_v29  ;;  %v1438_v63 = vmul.f32 %v366_v31, %v366_v31 }
  0x62   : > { %v258_v36 = vld [vmem:[%s1349_s5 + $0xb0] sm:$0xff]  ;;  %v308_v37 = vld [vmem:[%s1356_s7 + $0x40] sm:$0xff]  ;;  %v309_v38 = vld [vmem:[%s1356_s7 + $0x48] sm:$0xff]  ;;  %v1408_v42 = vsub.f32 %v243_v8, %v307_v30  ;;  %2182 = vst [vmem:[#allocation11_spill] sm:$0xff] %v1410_v43 }
  0x63   : > { %v310_v39 = vld [vmem:[%s1356_s7 + $0x50] sm:$0xff]  ;;  %v259_v44 = vld [vmem:[%s1349_s5 + $0xb8] sm:$0xff]  ;;  %v260_v45 = vld [vmem:[%s1349_s5 + $0xc0] sm:$0xff]  ;;  %v1418_v50 = vsub.f32 %v244_v9, %v308_v37  ;;  %v1420_v51 = vsub.f32 %v245_v10, %v309_v38  ;;  %2183 = vst [vmem:[#allocation12_spill] sm:$0xff] %v1424_v53  ;;  %v1452_v9 = vmul.f32 %v367_v32, %v367_v32  ;;  %v1480_v29 = vmul.f32 %v369_v40, %v369_v40 }
  0x64   : > { %v261_v46 = vld [vmem:[%s1349_s5 + $0xc8] sm:$0xff]  ;;  %v311_v47 = vld [vmem:[%s1356_s7 + $0x58] sm:$0xff]  ;;  %v312_v48 = vld [vmem:[%s1356_s7 + $0x60] sm:$0xff]  ;;  %v1422_v52 = vsub.f32 %v246_v11, %v310_v39  ;;  %2184 = vst [vmem:[#allocation13_spill] sm:$0xff] %v1438_v63  ;;  %v1494_v39 = vmul.f32 %v370_v41, %v370_v41  ;;  %v1510_v41 = vmul.f32 %v1408_v42, %v1408_v42 }
  0x65   : > { %v313_v49 = vld [vmem:[%s1356_s7 + $0x68] sm:$0xff]  ;;  %v262_v54 = vld [vmem:[%s1349_s5 + $0xd0] sm:$0xff]  ;;  %v263_v55 = vld [vmem:[%s1349_s5 + $0xd8] sm:$0xff]  ;;  %v1432_v60 = vsub.f32 %v247_v12, %v311_v47  ;;  %v1434_v61 = vsub.f32 %v248_v13, %v312_v48  ;;  %2185 = vst [vmem:[#allocation14_spill] sm:$0xff] %v1452_v9  ;;  %v1526_v42 = vmul.f32 %v1418_v50, %v1418_v50  ;;  %v1542_v50 = vmul.f32 %v1420_v51, %v1420_v51 }
  0x66   : > { %v264_v56 = vld [vmem:[%s1349_s5 + $0xe0] sm:$0xff]  ;;  %v314_v57 = vld [vmem:[%s1356_s7 + $0x70] sm:$0xff]  ;;  %v315_v58 = vld [vmem:[%s1356_s7 + $0x78] sm:$0xff]  ;;  %v1436_v62 = vsub.f32 %v249_v14, %v313_v49  ;;  %2187 = vst [vmem:[#allocation16_spill] sm:$0xff] %v1480_v29  ;;  %v1558_v51 = vmul.f32 %v1422_v52, %v1422_v52 }
  0x67   : > { %v316_v59 = vld [vmem:[%s1356_s7 + $0x80] sm:$0xff]  ;;  %v265_v0 = vld [vmem:[%s1349_s5 + $0xe8] sm:$0xff]  ;;  %v266_v1 = vld [vmem:[%s1349_s5 + $0xf0] sm:$0xff]  ;;  %v1446_v6 = vsub.f32 %v250_v17, %v314_v57  ;;  %v1448_v7 = vsub.f32 %v251_v18, %v315_v58  ;;  %2188 = vst [vmem:[#allocation17_spill] sm:$0xff] %v1494_v39  ;;  %v1574_v52 = vmul.f32 %v1432_v60, %v1432_v60  ;;  %v1590_v60 = vmul.f32 %v1434_v61, %v1434_v61 }
  0x68   : > { %v267_v2 = vld [vmem:[%s1349_s5 + $0xf8] sm:$0xff]  ;;  %v317_v3 = vld [vmem:[%s1356_s7 + $0x88] sm:$0xff]  ;;  %v318_v4 = vld [vmem:[%s1356_s7 + $0x90] sm:$0xff]  ;;  %v1450_v8 = vsub.f32 %v252_v19, %v316_v59  ;;  %v1466_v19 = vmul.f32 %v368_v33, %v368_v33  ;;  %2189 = vst [vmem:[#allocation18_spill] sm:$0xff] %v1510_v41 }
  0x69   : > { %v319_v5 = vld [vmem:[%s1356_s7 + $0x98] sm:$0xff]  ;;  %v268_v10 = vld [vmem:[%s1349_s5 + $0x100] sm:$0xff]  ;;  %v269_v11 = vld [vmem:[%s1349_s5 + $0x108] sm:$0xff]  ;;  %v1460_v16 = vsub.f32 %v253_v25, %v317_v3  ;;  %v1462_v17 = vsub.f32 %v254_v26, %v318_v4  ;;  %2190 = vst [vmem:[#allocation19_spill] sm:$0xff] %v1526_v42 }
  0x6a   : > { %v270_v12 = vld [vmem:[%s1349_s5 + $0x110] sm:$0xff]  ;;  %v320_v13 = vld [vmem:[%s1356_s7 + $0xa0] sm:$0xff]  ;;  %v321_v14 = vld [vmem:[%s1356_s7 + $0xa8] sm:$0xff]  ;;  %v1464_v18 = vsub.f32 %v255_v27, %v319_v5  ;;  %2186 = vst [vmem:[#allocation15_spill] sm:$0xff] %v1466_v19 }
  0x6b   : > { %v322_v15 = vld [vmem:[%s1356_s7 + $0xb0] sm:$0xff]  ;;  %v271_v20 = vld [vmem:[%s1349_s5 + $0x118] sm:$0xff]  ;;  %v272_v21 = vld [vmem:[%s1349_s5 + $0x120] sm:$0xff]  ;;  %v1474_v25 = vsub.f32 %v256_v34, %v320_v13  ;;  %v1476_v26 = vsub.f32 %v257_v35, %v321_v14  ;;  %2191 = vst [vmem:[#allocation20_spill] sm:$0xff] %v1542_v50 }
  0x6c   : > { %v273_v22 = vld [vmem:[%s1349_s5 + $0x128] sm:$0xff]  ;;  %v323_v23 = vld [vmem:[%s1356_s7 + $0xb8] sm:$0xff]  ;;  %v324_v24 = vld [vmem:[%s1356_s7 + $0xc0] sm:$0xff]  ;;  %v1478_v27 = vsub.f32 %v258_v36, %v322_v15  ;;  %2192 = vst [vmem:[#allocation21_spill] sm:$0xff] %v1558_v51 }
  0x6d   : > { %v325_v28 = vld [vmem:[%s1356_s7 + $0xc8] sm:$0xff]  ;;  %v274_v30 = vld [vmem:[%s1349_s5 + $0x130] sm:$0xff]  ;;  %v275_v31 = vld [vmem:[%s1349_s5 + $0x138] sm:$0xff]  ;;  %v1488_v34 = vsub.f32 %v259_v44, %v323_v23  ;;  %v1490_v35 = vsub.f32 %v260_v45, %v324_v24  ;;  %2193 = vst [vmem:[#allocation22_spill] sm:$0xff] %v1574_v52 }
  0x6e   : > { %v276_v32 = vld [vmem:[%s1349_s5 + $0x140] sm:$0xff]  ;;  %v326_v33 = vld [vmem:[%s1356_s7 + $0xd0] sm:$0xff]  ;;  %v327_v37 = vld [vmem:[%s1356_s7 + $0xd8] sm:$0xff]  ;;  %v1492_v36 = vsub.f32 %v261_v46, %v325_v28  ;;  %2196 = vst [vmem:[#allocation25_spill] sm:$0xff] %v1590_v60 }
  0x6f   : > { %v328_v38 = vld [vmem:[%s1356_s7 + $0xe0] sm:$0xff]  ;;  %v277_v40 = vld [vmem:[%s1349_s5 + $0x148] sm:$0xff]  ;;  %v278_v47 = vld [vmem:[%s1349_s5 + $0x150] sm:$0xff]  ;;  %v1502_v44 = vsub.f32 %v262_v54, %v326_v33  ;;  %v1504_v45 = vsub.f32 %v263_v55, %v327_v37 }
  0x70   : > { %v279_v48 = vld [vmem:[%s1349_s5 + $0x158] sm:$0xff]  ;;  %v329_v49 = vld [vmem:[%s1356_s7 + $0xe8] sm:$0xff]  ;;  %v330_v57 = vld [vmem:[%s1356_s7 + $0xf0] sm:$0xff]  ;;  %v1506_v46 = vsub.f32 %v264_v56, %v328_v38 }
  0x71   : > { %v331_v58 = vld [vmem:[%s1356_s7 + $0xf8] sm:$0xff]  ;;  %v280_v59 = vld [vmem:[%s1349_s5 + $0x160] sm:$0xff]  ;;  %v281_v3 = vld [vmem:[%s1349_s5 + $0x168] sm:$0xff]  ;;  %v1518_v14 = vsub.f32 %v265_v0, %v329_v49  ;;  %v1520_v55 = vsub.f32 %v266_v1, %v330_v57 }
  0x72   : > { %v282_v4 = vld [vmem:[%s1349_s5 + $0x170] sm:$0xff]  ;;  %v332_v5 = vld [vmem:[%s1356_s7 + $0x100] sm:$0xff]  ;;  %v333_v13 = vld [vmem:[%s1356_s7 + $0x108] sm:$0xff]  ;;  %v1522_v56 = vsub.f32 %v267_v2, %v331_v58 }
  0x73   : > { %v334_v54 = vld [vmem:[%s1356_s7 + $0x110] sm:$0xff]  ;;  %v283_v15 = vld [vmem:[%s1349_s5 + $0x178] sm:$0xff]  ;;  %v284_v23 = vld [vmem:[%s1349_s5 + $0x180] sm:$0xff]  ;;  %v1534_v37 = vsub.f32 %v268_v10, %v332_v5  ;;  %v1536_v1 = vsub.f32 %v269_v11, %v333_v13 }
  0x74   : > { %v285_v24 = vld [vmem:[%s1349_s5 + $0x188] sm:$0xff]  ;;  %v335_v28 = vld [vmem:[%s1356_s7 + $0x118] sm:$0xff]  ;;  %v336_v33 = vld [vmem:[%s1356_s7 + $0x120] sm:$0xff]  ;;  %v1538_v2 = vsub.f32 %v270_v12, %v334_v54 }
  0x75   : > { %v337_v0 = vld [vmem:[%s1356_s7 + $0x128] sm:$0xff]  ;;  %v286_v38 = vld [vmem:[%s1349_s5 + $0x190] sm:$0xff]  ;;  %v287_v49 = vld [vmem:[%s1349_s5 + $0x198] sm:$0xff]  ;;  %v1550_v5 = vsub.f32 %v271_v20, %v335_v28  ;;  %v1552_v11 = vsub.f32 %v272_v21, %v336_v33 }
  0x76   : > { %v288_v57 = vld [vmem:[%s1349_s5 + $0x1a0] sm:$0xff]  ;;  %v338_v58 = vld [vmem:[%s1356_s7 + $0x130] sm:$0xff]  ;;  %v339_v42 = vld [vmem:[%s1356_s7 + $0x138] sm:$0xff]  ;;  %v1554_v12 = vsub.f32 %v273_v22, %v337_v0 }
  0x77   : > { %v340_v10 = vld [vmem:[%s1356_s7 + $0x140] sm:$0xff]  ;;  %v289_v13 = vld [vmem:[%s1349_s5 + $0x1a8] sm:$0xff]  ;;  %v290_v54 = vld [vmem:[%s1349_s5 + $0x1b0] sm:$0xff]  ;;  %v1566_v28 = vsub.f32 %v274_v30, %v338_v58  ;;  %v1568_v21 = vsub.f32 %v275_v31, %v339_v42 }
  0x78   : > { %v291_v50 = vld [vmem:[%s1349_s5 + $0x1b8] sm:$0xff]  ;;  %v341_v41 = vld [vmem:[%s1356_s7 + $0x148] sm:$0xff]  ;;  %v342_v9 = vld [vmem:[%s1356_s7 + $0x150] sm:$0xff]  ;;  %v1570_v22 = vsub.f32 %v276_v32, %v340_v10 }
  0x79   : > { %v343_v20 = vld [vmem:[%s1356_s7 + $0x158] sm:$0xff]  ;;  %v292_v33 = vld [vmem:[%s1349_s5 + $0x1c0] sm:$0xff]  ;;  %v293_v0 = vld [vmem:[%s1349_s5 + $0x1c8] sm:$0xff]  ;;  %v1582_v58 = vsub.f32 %v277_v40, %v341_v41  ;;  %v1584_v31 = vsub.f32 %v278_v47, %v342_v9 }
  0x7a   : > { %v294_v51 = vld [vmem:[%s1349_s5 + $0x1d0] sm:$0xff]  ;;  %v344_v39 = vld [vmem:[%s1356_s7 + $0x160] sm:$0xff]  ;;  %v345_v63 = vld [vmem:[%s1356_s7 + $0x168] sm:$0xff]  ;;  %v1586_v32 = vsub.f32 %v279_v48, %v343_v20  ;;  %v1606_v48 = vmul.f32 %v1436_v62, %v1436_v62 }
  0x7b   : > { %v346_v30 = vld [vmem:[%s1356_s7 + $0x170] sm:$0xff]  ;;  %2194 = vst [vmem:[#allocation23_spill] sm:$0xff] %v1584_v31  ;;  %v295_v42 = vld [vmem:[%s1349_s5 + $0x1d8] sm:$0xff]  ;;  %v296_v10 = vld [vmem:[%s1349_s5 + $0x1e0] sm:$0xff]  ;;  %v1598_v41 = vsub.f32 %v280_v59, %v344_v39  ;;  %v1600_v9 = vsub.f32 %v281_v3, %v345_v63  ;;  %v1615_v63 = vmul.f32 %v1446_v6, %v1446_v6 }
  0x7c   : > { %2195 = vst [vmem:[#allocation24_spill] sm:$0xff] %v1586_v32  ;;  %v297_v52 = vld [vmem:[%s1349_s5 + $0x1e8] sm:$0xff]  ;;  %v347_v29 = vld [vmem:[%s1356_s7 + $0x178] sm:$0xff]  ;;  %v348_v53 = vld [vmem:[%s1356_s7 + $0x180] sm:$0xff]  ;;  %v1602_v47 = vsub.f32 %v282_v4, %v346_v30 }
  0x7d   : > { %v349_v40 = vld [vmem:[%s1356_s7 + $0x188] sm:$0xff]  ;;  %2197 = vst [vmem:[#allocation26_spill] sm:$0xff] %v1600_v9  ;;  %2199 = vst [vmem:[#allocation28_spill] sm:$0xff] %v1606_v48  ;;  %v298_v61 = vld [vmem:[%s1349_s5 + $0x1f0] sm:$0xff]  ;;  %v411_v32 = vsub.f32 %v283_v15, %v347_v29  ;;  %v412_v31 = vsub.f32 %v284_v23, %v348_v53 }
  0x7e   : > { %2198 = vst [vmem:[#allocation27_spill] sm:$0xff] %v1602_v47  ;;  %v299_v20 = vld [vmem:[%s1349_s5 + $0x1f8] sm:$0xff]  ;;  %v350_v60 = vld [vmem:[%s1356_s7 + $0x190] sm:$0xff]  ;;  %v352_v43 = vld [vmem:[%s1356_s7 + $0x1a0] sm:$0xff]  ;;  %v413_v39 = vsub.f32 %v285_v24, %v349_v40  ;;  %v1622_v47 = vmul.f32 %v1448_v7, %v1448_v7  ;;  %v1629_v40 = vmul.f32 %v1450_v8, %v1450_v8  ;;  %v1636_v7 = vmul.f32 %v1460_v16, %v1460_v16 }
  0x7f   : > { %v351_v19 = vld [vmem:[%s1356_s7 + $0x198] sm:$0xff]  ;;  %2200 = vst [vmem:[#allocation29_spill] sm:$0xff] %v1615_v63  ;;  %v353_v59 = vld [vmem:[%s1356_s7 + $0x1a8] sm:$0xff]  ;;  %v354_v62 = vld [vmem:[%s1356_s7 + $0x1b0] sm:$0xff]  ;;  %v414_v4 = vsub.f32 %v286_v38, %v350_v60  ;;  %v416_v48 = vsub.f32 %v288_v57, %v352_v43  ;;  %v1654_v16 = vmul.f32 %v1476_v26, %v1476_v26  ;;  %v1674_v26 = vmul.f32 %v1502_v44, %v1502_v44 }
  0x80   : > { %v355_v3 = vld [vmem:[%s1356_s7 + $0x1b8] sm:$0xff]  ;;  %v415_v30 = vsub.f32 %v287_v49, %v351_v19  ;;  %2201 = vst [vmem:[#allocation30_spill] sm:$0xff] %v1622_v47  ;;  %v356_v53 = vld [vmem:[%s1356_s7 + $0x1c0] sm:$0xff]  ;;  %v357_v29 = vld [vmem:[%s1356_s7 + $0x1c8] sm:$0xff]  ;;  %v417_v23 = vsub.f32 %v289_v13, %v353_v59  ;;  %v418_v6 = vsub.f32 %v290_v54, %v354_v62  ;;  %v1694_v44 = vmul.f32 %v1522_v56, %v1522_v56 }
  0x81   : > { %v358_v15 = vld [vmem:[%s1356_s7 + $0x1d0] sm:$0xff]  ;;  %v419_v24 = vsub.f32 %v291_v50, %v355_v3  ;;  %v359_v63 = vld [vmem:[%s1356_s7 + $0x1d8] sm:$0xff]  ;;  %v360_v38 = vld [vmem:[%s1356_s7 + $0x1e0] sm:$0xff]  ;;  %v420_v43 = vsub.f32 %v292_v33, %v356_v53  ;;  %v421_v49 = vsub.f32 %v293_v0, %v357_v29  ;;  %v1642_v50 = vmul.f32 %v1462_v17, %v1462_v17 }
  0x82   : > { %v361_v19 = vld [vmem:[%s1356_s7 + $0x1e8] sm:$0xff]  ;;  %v422_v57 = vsub.f32 %v294_v51, %v358_v15  ;;  %v362_v60 = vld [vmem:[%s1356_s7 + $0x1f0] sm:$0xff]  ;;  %v363_v47 = vld [vmem:[%s1356_s7 + $0x1f8] sm:$0xff]  ;;  %v423_v9 = vsub.f32 %v295_v42, %v359_v63  ;;  %v424_v13 = vsub.f32 %v296_v10, %v360_v38  ;;  %v1646_v33 = vmul.f32 %v1464_v18, %v1464_v18 }
  0x83   : > { %v425_v54 = vsub.f32 %v297_v52, %v361_v19  ;;  %v426_v8 = vsub.f32 %v298_v61, %v362_v60  ;;  %v427_v59 = vsub.f32 %v299_v20, %v363_v47  ;;  %v1650_v51 = vmul.f32 %v1474_v25, %v1474_v25  ;;  %v2203_v0 = vld [vmem:[#allocation23_spill] sm:$0xff]  ;;  %v2204_v42 = vld [vmem:[#allocation24_spill] sm:$0xff]  ;;  %v2225_v60 = vld [vmem:[#allocation13_spill] sm:$0xff] (!%p926_p0) }
  0x84   : > { %v1658_v52 = vmul.f32 %v1478_v27, %v1478_v27  ;;  %v1662_v17 = vmul.f32 %v1488_v34, %v1488_v34  ;;  %v1666_v18 = vmul.f32 %v1490_v35, %v1490_v35  ;;  %v1670_v25 = vmul.f32 %v1492_v36, %v1492_v36  ;;  %v2206_v10 = vld [vmem:[#allocation26_spill] sm:$0xff] }
  0x85   : > { %v1678_v27 = vmul.f32 %v1504_v45, %v1504_v45  ;;  %v1682_v34 = vmul.f32 %v1506_v46, %v1506_v46  ;;  %v1686_v35 = vmul.f32 %v1518_v14, %v1518_v14  ;;  %v1690_v36 = vmul.f32 %v1520_v55, %v1520_v55  ;;  %v2207_v47 = vld [vmem:[#allocation27_spill] sm:$0xff] }
  0x86   : > { %v1698_v45 = vmul.f32 %v1534_v37, %v1534_v37  ;;  %v1702_v46 = vmul.f32 %v1536_v1, %v1536_v1  ;;  %v1706_v14 = vmul.f32 %v1538_v2, %v1538_v2  ;;  %v1710_v55 = vmul.f32 %v1550_v5, %v1550_v5 }
  0x87   : > { %v1714_v56 = vmul.f32 %v1552_v11, %v1552_v11  ;;  %v1718_v37 = vmul.f32 %v1554_v12, %v1554_v12  ;;  %v1722_v1 = vmul.f32 %v1566_v28, %v1566_v28  ;;  %v1726_v2 = vmul.f32 %v1568_v21, %v1568_v21 }
  0x88   : > { %v1730_v5 = vmul.f32 %v1570_v22, %v1570_v22  ;;  %v1734_v11 = vmul.f32 %v1582_v58, %v1582_v58  ;;  %v1738_v12 = vmul.f32 %v2203_v0, %v2203_v0  ;;  %v1742_v28 = vmul.f32 %v2204_v42, %v2204_v42  ;;  %v2228_v42 = vld [vmem:[#allocation18_spill] sm:$0xff] (!%p926_p0) }
  0x89   : > { %2202 = vst [vmem:[#allocation31_spill] sm:$0xff] %v1726_v2  ;;  %v1746_v21 = vmul.f32 %v1598_v41, %v1598_v41  ;;  %v1750_v22 = vmul.f32 %v2206_v10, %v2206_v10  ;;  %v1754_v58 = vmul.f32 %v2207_v47, %v2207_v47  ;;  %v1756_v61 = vmul.f32 %v411_v32, %v411_v32  ;;  %v2229_v10 = vld [vmem:[#allocation19_spill] sm:$0xff] (!%p926_p0)  ;;  %v2230_v47 = vld [vmem:[#allocation20_spill] sm:$0xff] (!%p926_p0) }
  0x8a   : > { %2205 = vst [vmem:[#allocation23_spill] sm:$0xff] %v1742_v28  ;;  %v1758_v20 = vmul.f32 %v412_v31, %v412_v31  ;;  %v1760_v63 = vmul.f32 %v413_v39, %v413_v39  ;;  %v1762_v62 = vmul.f32 %v414_v4, %v414_v4  ;;  %v1764_v3 = vmul.f32 %v415_v30, %v415_v30 }
  0x8b   : > { %2208 = vst [vmem:[#allocation24_spill] sm:$0xff] %v1756_v61  ;;  %v1766_v41 = vmul.f32 %v416_v48, %v416_v48  ;;  %v1768_v53 = vmul.f32 %v417_v23, %v417_v23  ;;  %v1770_v29 = vmul.f32 %v418_v6, %v418_v6  ;;  %v1772_v15 = vmul.f32 %v419_v24, %v419_v24  ;;  %496 = sbr.rel (%p926_p0) target bundleno = 177 (0xb1), region = 44  ;;  %v2221_v6 = vld [vmem:[#allocation11_spill] sm:$0xff] (!%p926_p0) }
  0x8c   : > { %2209 = vst [vmem:[#allocation26_spill] sm:$0xff] %v1762_v62  ;;  %2210 = vst [vmem:[#allocation27_spill] sm:$0xff] %v1764_v3  ;;  %v1774_v38 = vmul.f32 %v420_v43, %v420_v43  ;;  %v1776_v32 = vmul.f32 %v421_v49, %v421_v49  ;;  %v1778_v31 = vmul.f32 %v422_v57, %v422_v57  ;;  %v2222_v24 = vld [vmem:[#allocation15_spill] sm:$0xff] (!%p926_p0)  ;;  %v2223_v43 = vld [vmem:[#allocation12_spill] sm:$0xff] (!%p926_p0) }
  0x8d   : > { %2211 = vst [vmem:[#allocation32_spill] sm:$0xff] %v1770_v29  ;;  %2212 = vst [vmem:[#allocation33_spill] sm:$0xff] %v1772_v15  ;;  %v1780_v39 = vmul.f32 %v423_v9, %v423_v9  ;;  %v1782_v4 = vmul.f32 %v424_v13, %v424_v13  ;;  %v1784_v30 = vmul.f32 %v425_v54, %v425_v54  ;;  %v2224_v49 = vld [vmem:[#allocation16_spill] sm:$0xff] (!%p926_p0)  ;;  %v2226_v9 = vld [vmem:[#allocation17_spill] sm:$0xff] (!%p926_p0) }
  0x8e   : > { %2213 = vst [vmem:[#allocation34_spill] sm:$0xff] %v1774_v38  ;;  %2214 = vst [vmem:[#allocation35_spill] sm:$0xff] %v1776_v32  ;;  %v1786_v48 = vmul.f32 %v426_v8, %v426_v8  ;;  %v1788_v23 = vmul.f32 %v427_v59, %v427_v59  ;;  %v501_v19 = vadd.f32 (!%p926_p0), %v2222_v24, %v2221_v6  ;;  %v2227_v13 = vld [vmem:[#allocation14_spill] sm:$0xff] (!%p926_p0)  ;;  %v2234_v6 = vld [vmem:[#allocation28_spill] sm:$0xff] (!%p926_p0) }
  0x8f   : > { %2215 = vst [vmem:[#allocation36_spill] sm:$0xff] %v1778_v31  ;;  %2216 = vst [vmem:[#allocation37_spill] sm:$0xff] %v1780_v39  ;;  %v516_v57 = vadd.f32 (!%p926_p0), %v2224_v49, %v2223_v43  ;;  %v531_v0 = vadd.f32 (!%p926_p0), %v2226_v9, %v2225_v60  ;;  %v546_v54 = vadd.f32 (!%p926_p0), %v2228_v42, %v2227_v13  ;;  %v2233_v39 = vld [vmem:[#allocation25_spill] sm:$0xff] (!%p926_p0)  ;;  %v2236_v49 = vld [vmem:[#allocation30_spill] sm:$0xff] (!%p926_p0) }
  0x90   : > { %2217 = vst [vmem:[#allocation38_spill] sm:$0xff] %v1782_v4  ;;  %2218 = vst [vmem:[#allocation39_spill] sm:$0xff] %v1784_v30  ;;  %v502_v8 = vadd.f32 (!%p926_p0), %v501_v19, %v2229_v10  ;;  %v2232_v30 = vld [vmem:[#allocation22_spill] sm:$0xff] (!%p926_p0)  ;;  %v2235_v32 = vld [vmem:[#allocation29_spill] sm:$0xff] (!%p926_p0) }
  0x91   : > { %2219 = vst [vmem:[#allocation40_spill] sm:$0xff] %v1786_v48  ;;  %2220 = vst [vmem:[#allocation41_spill] sm:$0xff] %v1788_v23  ;;  %v517_v59 = vadd.f32 (!%p926_p0), %v516_v57, %v2230_v47  ;;  %v2231_v23 = vld [vmem:[#allocation21_spill] sm:$0xff] (!%p926_p0)  ;;  %v547_v4 = vadd.f32 (!%p926_p0), %v546_v54, %v2232_v30 }
  0x92   : > { %v532_v48 = vadd.f32 %v531_v0, %v2231_v23  ;;  %v503_v31 = vadd.f32 %v502_v8, %v2233_v39 }
  0x93   : > { %v518_v24 = vadd.f32 %v517_v59, %v2234_v6  ;;  %v548_v38 = vadd.f32 %v547_v4, %v2236_v49 }
  0x94   : > { %v533_v43 = vadd.f32 %v532_v48, %v2235_v32  ;;  %v504_v60 = vadd.f32 %v503_v31, %v1629_v40 }
  0x95   : > { %v519_v9 = vadd.f32 %v518_v24, %v1636_v7  ;;  %v549_v57 = vadd.f32 %v548_v38, %v1646_v33 }
  0x96   : > { %v534_v19 = vadd.f32 %v533_v43, %v1642_v50  ;;  %v505_v23 = vadd.f32 %v504_v60, %v1650_v51 }
  0x97   : > { %v520_v30 = vadd.f32 %v519_v9, %v1654_v16  ;;  %v550_v0 = vadd.f32 %v549_v57, %v1662_v17 }
  0x98   : > { %v535_v39 = vadd.f32 %v534_v19, %v1658_v52  ;;  %v506_v32 = vadd.f32 %v505_v23, %v1666_v18 }
  0x99   : > { %v521_v4 = vadd.f32 %v520_v30, %v1670_v25  ;;  %v551_v48 = vadd.f32 %v550_v0, %v1678_v27 }
  0x9a   : > { %v536_v31 = vadd.f32 %v535_v39, %v1674_v26  ;;  %v507_v13 = vadd.f32 %v506_v32, %v1682_v34 }
  0x9b   : > { %v522_v38 = vadd.f32 %v521_v4, %v1686_v35  ;;  %v552_v54 = vadd.f32 %v551_v48, %v1694_v44 }
  0x9c   : > { %v537_v42 = vadd.f32 %v536_v31, %v1690_v36  ;;  %v508_v10 = vadd.f32 %v507_v13, %v1698_v45 }
  0x9d   : > { %v523_v8 = vadd.f32 %v522_v38, %v1702_v46  ;;  %v553_v59 = vadd.f32 %v552_v54, %v1710_v55 }
  0x9e   : > { %v538_v47 = vadd.f32 %v537_v42, %v1706_v14  ;;  %v509_v6 = vadd.f32 %v508_v10, %v1714_v56  ;;  %v497_v10 = vld [vmem:[%s1368_s21] sm:$0xff] }
  0x9f   : > { %v524_v24 = vadd.f32 %v523_v8, %v1718_v37  ;;  %v554_v49 = vadd.f32 %v553_v59, %v1726_v2  ;;  %v2237_v8 = vld [vmem:[#allocation34_spill] sm:$0xff]  ;;  %v2238_v59 = vld [vmem:[#allocation35_spill] sm:$0xff] }
  0xa0   : > { %v539_v43 = vadd.f32 %v538_v47, %v1722_v1  ;;  %v510_v60 = vadd.f32 %v509_v6, %v1730_v5 }
  0xa1   : > { %v525_v9 = vadd.f32 %v524_v24, %v1734_v11  ;;  %v555_v57 = vadd.f32 %v554_v49, %v1742_v28  ;;  %v2239_v24 = vld [vmem:[#allocation36_spill] sm:$0xff]  ;;  %v2240_v49 = vld [vmem:[#allocation37_spill] sm:$0xff] }
  0xa2   : > { %v540_v19 = vadd.f32 %v539_v43, %v1738_v12  ;;  %v511_v23 = vadd.f32 %v510_v60, %v1746_v21 }
  0xa3   : > { %v526_v30 = vadd.f32 %v525_v9, %v1750_v22  ;;  %v556_v0 = vadd.f32 %v555_v57, %v1756_v61  ;;  %v498_v9 = vld [vmem:[%s1368_s21 + $0x8] sm:$0xff]  ;;  %v500_v57 = vld [vmem:[%s1368_s21 + $0x18] sm:$0xff] }
  0xa4   : > { %v541_v39 = vadd.f32 %v540_v19, %v1754_v58  ;;  %v512_v32 = vadd.f32 %v511_v23, %v1758_v20  ;;  %v499_v19 = vld [vmem:[%s1368_s21 + $0x10] sm:$0xff]  ;;  %v2241_v23 = vld [vmem:[#allocation38_spill] sm:$0xff] }
  0xa5   : > { %v527_v4 = vadd.f32 %v526_v30, %v1760_v63  ;;  %v557_v48 = vadd.f32 %v556_v0, %v1764_v3 }
  0xa6   : > { %v542_v31 = vadd.f32 %v541_v39, %v1762_v62  ;;  %v513_v13 = vadd.f32 %v512_v32, %v1766_v41  ;;  %v2242_v39 = vld [vmem:[#allocation39_spill] sm:$0xff]  ;;  %v2243_v32 = vld [vmem:[#allocation40_spill] sm:$0xff] }
  0xa7   : > { %v528_v38 = vadd.f32 %v527_v4, %v1768_v53  ;;  %v558_v54 = vadd.f32 %v557_v48, %v1772_v15 }
  0xa8   : > { %v543_v42 = vadd.f32 %v542_v31, %v1770_v29  ;;  %v514_v47 = vadd.f32 %v513_v13, %v2237_v8  ;;  %v2244_v31 = vld [vmem:[#allocation41_spill] sm:$0xff] }
  0xa9   : > { %v529_v6 = vadd.f32 %v528_v38, %v2238_v59  ;;  %v559_v60 = vadd.f32 %v558_v54, %v2240_v49 }
  0xaa   : > { %v544_v43 = vadd.f32 %v543_v42, %v2239_v24  ;;  %v515_v30 = vadd.f32 %v514_v47, %v2241_v23 }
  0xab   : > { %v530_v0 = vadd.f32 %v529_v6, %v2242_v39  ;;  %v560_v48 = vadd.f32 %v559_v60, %v2244_v31 }
  0xac   : > { %v545_v4 = vadd.f32 %v544_v43, %v2243_v32  ;;  %v561_v13 = vadd.f32 %v515_v30, %v497_v10 }
  0xad   : > { %v562_v8 = vadd.f32 %v530_v0, %v498_v9  ;;  %v564_v59 = vadd.f32 %v560_v48, %v500_v57 }
  0xae   : > { %v563_v38 = vadd.f32 %v545_v4, %v499_v19  ;;  %565 = vst [vmem:[%s1368_s21] sm:$0xff] %v561_v13 }
  0xaf   : > { %566 = vst [vmem:[%s1368_s21 + $0x8] sm:$0xff] %v562_v8  ;;  %568 = vst [vmem:[%s1368_s21 + $0x18] sm:$0xff] %v564_v59 }
  0xb0   : > { %567 = vst [vmem:[%s1368_s21 + $0x10] sm:$0xff] %v563_v38 }
  0xb1 PF: > { %p927_p3 = scmp.le.s32.totalorder %s1366_s19, 256 }
  0xb2   : > { %v573_v42 = vlaneseq (!%p927_p3)  ;;  %v590_v6 = vstv (!%p927_p3), %s925_s18  ;;  %v2245_v32 = vld [vmem:[#allocation11_spill] sm:$0xff] (!%p927_p3)  ;;  %v2248_v61 = vld [vmem:[#allocation25_spill] sm:$0xff] (!%p927_p3)  ;;  %v2249_v2 = vld [vmem:[#allocation12_spill] sm:$0xff] (!%p927_p3) }
  0xb3   : > { %572 = sbr.rel (%p927_p3) target bundleno = 238 (0xee), region = 48  ;;  %v2246_v31 = vld [vmem:[#allocation15_spill] sm:$0xff] (!%p927_p3) }
  0xb4   : > { %v574_v54 = vshrl.u32 (!%p927_p3), %v573_v42, 7 }
  0xb6   : > { %v575_v47 = vadd.s32 (!%p927_p3), 8, %v574_v54  ;;  %v576_v24 = vadd.s32 (!%p927_p3), 16, %v574_v54  ;;  %v577_v43 = vadd.s32 (!%p927_p3), 24, %v574_v54  ;;  %v1866_v10 = vadd.s32 (!%p927_p3), %v590_v6, %v574_v54 }
  0xb7   : > { %v578_v60 = vadd.s32 (!%p927_p3), 32, %v574_v54  ;;  %v579_v19 = vadd.s32 (!%p927_p3), 40, %v574_v54  ;;  %v580_v23 = vadd.s32 (!%p927_p3), 48, %v574_v54  ;;  %v581_v39 = vadd.s32 (!%p927_p3), 56, %v574_v54 }
  0xb8   : > { %v1868_v49 = vadd.s32 (!%p927_p3), %v590_v6, %v575_v47  ;;  %v1870_v9 = vadd.s32 (!%p927_p3), %v590_v6, %v576_v24  ;;  %v1872_v57 = vadd.s32 (!%p927_p3), %v590_v6, %v577_v43  ;;  %vm607_vm0 = vcmp.lt.s32.totalorder (!%p927_p3), %v1866_v10, 256  ;;  %v2247_v24 = vld [vmem:[#allocation19_spill] sm:$0xff] (!%p927_p3) }
  0xb9   : > { %v1876_v30 = vadd.s32 (!%p927_p3), %v590_v6, %v578_v60  ;;  %v582_v0 = vadd.s32 (!%p927_p3), 64, %v574_v54  ;;  %v655_v4 = vsel (!%p927_p3), %vm607_vm0, %v2245_v32, 0.0  ;;  %v583_v13 = vadd.s32 (!%p927_p3), 72, %v574_v54 }
  0xba   : > { %vm608_vm1 = vcmp.lt.s32.totalorder %v1868_v49, 256  ;;  %vm609_vm2 = vcmp.lt.s32.totalorder %v1870_v9, 256  ;;  %v584_v8 = vadd.s32 80, %v574_v54  ;;  %v1885_v38 = vadd.s32 %v590_v6, %v579_v19 }
  0xbb   : > { %v659_v48 = vsel %vm608_vm1, %v2246_v31, 0.0  ;;  %vm610_vm3 = vcmp.lt.s32.totalorder %v1872_v57, 256  ;;  %v585_v59 = vadd.s32 88, %v574_v54  ;;  %v586_v42 = vadd.s32 96, %v574_v54 }
  0xbc   : > { %v587_v47 = vadd.s32 104, %v574_v54  ;;  %v663_v43 = vsel %vm609_vm2, %v2247_v24, 0.0  ;;  %v588_v60 = vadd.s32 112, %v574_v54  ;;  %v1891_v15 = vadd.s32 %v590_v6, %v580_v23  ;;  %v2250_v24 = vld [vmem:[#allocation16_spill] sm:$0xff] }
  0xbd   : > { %vm611_vm4 = vcmp.lt.s32.totalorder %v1876_v30, 256  ;;  %v723_v32 = vadd.f32 %v659_v48, %v655_v4  ;;  %v589_v31 = vadd.s32 120, %v574_v54  ;;  %v1894_v3 = vadd.s32 %v590_v6, %v581_v39  ;;  %v2261_v30 = vld [vmem:[#allocation34_spill] sm:$0xff] }
  0xbe   : > { %v1896_v19 = vadd.s32 %v590_v6, %v582_v0  ;;  %v667_v28 = vsel %vm610_vm3, %v2248_v61, 0.0  ;;  %vm612_vm5 = vcmp.lt.s32.totalorder %v1885_v38, 256  ;;  %v656_v23 = vsel %vm607_vm0, %v2249_v2, 0.0  ;;  %v2251_v2 = vld [vmem:[#allocation20_spill] sm:$0xff]  ;;  %v2262_v38 = vld [vmem:[#allocation38_spill] sm:$0xff] }
  0xbf   : > { %v724_v29 = vadd.f32 %v723_v32, %v663_v43  ;;  %v660_v4 = vsel %vm608_vm1, %v2250_v24, 0.0  ;;  %v1908_v54 = vadd.s32 %v590_v6, %v583_v13  ;;  %v1910_v39 = vadd.s32 %v590_v6, %v584_v8 }
  0xc0   : > { %v1912_v0 = vadd.s32 %v590_v6, %v585_v59  ;;  %v671_v61 = vsel %vm611_vm4, %v1629_v40, 0.0  ;;  %v1917_v48 = vadd.s32 %v590_v6, %v586_v42  ;;  %vm613_vm6 = vcmp.lt.s32.totalorder %v1891_v15, 256  ;;  %v2252_v42 = vld [vmem:[#allocation28_spill] sm:$0xff]  ;;  %v719_v15 = vld [vmem:[%s1368_s21] sm:$0xff] }
  0xc1   : > { %v725_v43 = vadd.f32 %v724_v29, %v667_v28  ;;  %v664_v32 = vsel %vm609_vm2, %v2251_v2, 0.0  ;;  %v1923_v24 = vadd.s32 %v590_v6, %v587_v47  ;;  %v1925_v13 = vadd.s32 %v590_v6, %v588_v60  ;;  %v2253_v60 = vld [vmem:[#allocation13_spill] sm:$0xff] }
  0xc2   : > { %v675_v8 = vsel %vm612_vm5, %v1650_v51, 0.0  ;;  %v738_v59 = vadd.f32 %v660_v4, %v656_v23  ;;  %v1930_v62 = vadd.s32 %v590_v6, %v589_v31  ;;  %vm614_vm7 = vcmp.lt.s32.totalorder %v1894_v3, 256  ;;  %v2254_v23 = vld [vmem:[#allocation17_spill] sm:$0xff] }
  0xc3   : > { %v726_v40 = vadd.f32 %v725_v43, %v671_v61  ;;  %v668_v28 = vsel %vm610_vm3, %v2252_v42, 0.0  ;;  %vm615_vm8 = vcmp.lt.s32.totalorder %v1896_v19, 256  ;;  %vm616_vm9 = vcmp.lt.s32.totalorder %v1908_v54, 256  ;;  %v2255_v2 = vld [vmem:[#allocation21_spill] sm:$0xff]  ;;  %v720_v19 = vld [vmem:[%s1368_s21 + $0x8] sm:$0xff] }
  0xc4   : > { %v679_v29 = vsel %vm613_vm6, %v1666_v18, 0.0  ;;  %v739_v47 = vadd.f32 %v738_v59, %v664_v32  ;;  %v672_v6 = vsel %vm611_vm4, %v1636_v7, 0.0  ;;  %v657_v31 = vsel %vm607_vm0, %v2253_v60, 0.0  ;;  %v2269_v54 = vld [vmem:[#allocation36_spill] sm:$0xff] }
  0xc5   : > { %v727_v51 = vadd.f32 %v726_v40, %v675_v8  ;;  %v661_v4 = vsel %vm608_vm1, %v2254_v23, 0.0  ;;  %vm617_vm10 = vcmp.lt.s32.totalorder %v1910_v39, 256  ;;  %vm618_vm11 = vcmp.lt.s32.totalorder %v1912_v0, 256  ;;  %v2258_v23 = vld [vmem:[#allocation18_spill] sm:$0xff]  ;;  %v2273_v0 = vld [vmem:[#allocation33_spill] sm:$0xff] }
  0xc6   : > { %v683_v18 = vsel %vm614_vm7, %v1682_v34, 0.0  ;;  %v740_v61 = vadd.f32 %v739_v47, %v668_v28  ;;  %vm619_vm12 = vcmp.lt.s32.totalorder %v1917_v48, 256  ;;  %v676_v43 = vsel %vm612_vm5, %v1654_v16, 0.0  ;;  %v2256_v16 = vld [vmem:[#allocation29_spill] sm:$0xff] }
  0xc7   : > { %v728_v7 = vadd.f32 %v727_v51, %v679_v29  ;;  %v665_v32 = vsel %vm609_vm2, %v2255_v2, 0.0  ;;  %vm620_vm13 = vcmp.lt.s32.totalorder %v1923_v24, 256  ;;  %v687_v8 = vsel %vm615_vm8, %v1698_v45, 0.0 }
  0xc8   : > { %v741_v59 = vadd.f32 %v740_v61, %v672_v6  ;;  %v753_v34 = vadd.f32 %v661_v4, %v657_v31  ;;  %vm621_vm14 = vcmp.lt.s32.totalorder %v1925_v13, 256  ;;  %v680_v42 = vsel %vm613_vm6, %v1670_v25, 0.0  ;;  %v2257_v25 = vld [vmem:[#allocation14_spill] sm:$0xff] }
  0xc9   : > { %v729_v40 = vadd.f32 %v728_v7, %v683_v18  ;;  %v669_v28 = vsel %vm610_vm3, %v2256_v16, 0.0  ;;  %v691_v29 = vsel %vm616_vm9, %v1714_v56, 0.0  ;;  %v684_v45 = vsel %vm614_vm7, %v1686_v35, 0.0  ;;  %v2259_v7 = vld [vmem:[#allocation22_spill] sm:$0xff] }
  0xca   : > { %v742_v47 = vadd.f32 %v741_v59, %v676_v43  ;;  %v754_v51 = vadd.f32 %v753_v34, %v665_v32  ;;  %v673_v60 = vsel %vm611_vm4, %v1642_v50, 0.0  ;;  %v658_v31 = vsel %vm607_vm0, %v2257_v25, 0.0  ;;  %v2260_v59 = vld [vmem:[#allocation30_spill] sm:$0xff] }
  0xcb   : > { %v730_v6 = vadd.f32 %v729_v40, %v687_v8  ;;  %v662_v4 = vsel %vm608_vm1, %v2258_v23, 0.0  ;;  %vm622_vm15 = vcmp.lt.s32.totalorder %v1930_v62, 256  ;;  %v695_v35 = vsel %vm617_vm10, %v1730_v5, 0.0 }
  0xcc   : > { %v743_v56 = vadd.f32 %v742_v47, %v680_v42  ;;  %v755_v18 = vadd.f32 %v754_v51, %v669_v28  ;;  %v688_v50 = vsel %vm615_vm8, %v1702_v46, 0.0  ;;  %v677_v10 = vsel %vm612_vm5, %v1658_v52, 0.0 }
  0xcd   : > { %v731_v61 = vadd.f32 %v730_v6, %v691_v29  ;;  %v666_v49 = vsel %vm609_vm2, %v2259_v7, 0.0  ;;  %v699_v43 = vsel %vm618_vm11, %v1746_v21, 0.0  ;;  %v768_v32 = vadd.f32 %v662_v4, %v658_v31  ;;  %v2263_v7 = vld [vmem:[#allocation35_spill] sm:$0xff] }
  0xce   : > { %v744_v5 = vadd.f32 %v743_v56, %v684_v45  ;;  %v756_v2 = vadd.f32 %v755_v18, %v673_v60  ;;  %v692_v46 = vsel %vm616_vm9, %v1718_v37, 0.0  ;;  %v681_v52 = vsel %vm613_vm6, %v1674_v26, 0.0 }
  0xcf   : > { %v732_v8 = vadd.f32 %v731_v61, %v695_v35  ;;  %v670_v9 = vsel %vm610_vm3, %v2260_v59, 0.0  ;;  %v703_v21 = vsel %vm619_vm12, %v1758_v20, 0.0  ;;  %v769_v42 = vadd.f32 %v768_v32, %v666_v49 }
  0xd0   : > { %v745_v34 = vadd.f32 %v744_v5, %v688_v50  ;;  %v757_v40 = vadd.f32 %v756_v2, %v677_v10  ;;  %v696_v37 = vsel %vm617_vm10, %v1734_v11, 0.0  ;;  %v685_v26 = vsel %vm614_vm7, %v1690_v36, 0.0  ;;  %v2264_v2 = vld [vmem:[#allocation39_spill] sm:$0xff] }
  0xd1   : > { %v733_v16 = vadd.f32 %v732_v8, %v699_v43  ;;  %v674_v57 = vsel %vm611_vm4, %v1646_v33, 0.0  ;;  %v707_v20 = vsel %vm620_vm13, %v1766_v41, 0.0  ;;  %v770_v45 = vadd.f32 %v769_v42, %v670_v9  ;;  %v2265_v8 = vld [vmem:[#allocation26_spill] sm:$0xff] }
  0xd2   : > { %v746_v28 = vadd.f32 %v745_v34, %v692_v46  ;;  %v758_v29 = vadd.f32 %v757_v40, %v681_v52  ;;  %v700_v11 = vsel %vm618_vm11, %v1750_v22, 0.0  ;;  %v689_v36 = vsel %vm615_vm8, %v1706_v14, 0.0  ;;  %v2266_v52 = vld [vmem:[#allocation31_spill] sm:$0xff] }
  0xd3   : > { %v734_v47 = vadd.f32 %v733_v16, %v703_v21  ;;  %v678_v33 = vsel %vm612_vm5, %v1662_v17, 0.0  ;;  %v711_v41 = vsel %vm621_vm14, %v2261_v30, 0.0  ;;  %v771_v60 = vadd.f32 %v770_v45, %v674_v57  ;;  %v2267_v21 = vld [vmem:[#allocation32_spill] sm:$0xff]  ;;  %v2268_v40 = vld [vmem:[#allocation23_spill] sm:$0xff] }
  0xd4   : > { %v747_v51 = vadd.f32 %v746_v28, %v696_v37  ;;  %v759_v6 = vadd.f32 %v758_v29, %v685_v26  ;;  %v704_v22 = vsel %vm619_vm12, %v1760_v63, 0.0  ;;  %v693_v14 = vsel %vm616_vm9, %v1722_v1, 0.0 }
  0xd5   : > { %v735_v25 = vadd.f32 %v734_v47, %v707_v20  ;;  %v682_v17 = vsel %vm613_vm6, %v1678_v27, 0.0  ;;  %v715_v31 = vsel %vm622_vm15, %v2262_v38, 0.0  ;;  %v772_v35 = vadd.f32 %v771_v60, %v678_v33  ;;  %v2270_v20 = vld [vmem:[#allocation24_spill] sm:$0xff] }
  0xd6   : > { %v748_v23 = vadd.f32 %v747_v51, %v700_v11  ;;  %v760_v4 = vadd.f32 %v759_v6, %v689_v36  ;;  %v708_v63 = vsel %vm620_vm13, %v1768_v53, 0.0  ;;  %v697_v1 = vsel %vm617_vm10, %v1738_v12, 0.0  ;;  %v2271_v11 = vld [vmem:[#allocation40_spill] sm:$0xff]  ;;  %v2272_v36 = vld [vmem:[#allocation27_spill] sm:$0xff]  ;;  %v721_v51 = vld [vmem:[%s1368_s21 + $0x10] sm:$0xff] }
  0xd7   : > { %v736_v56 = vadd.f32 %v735_v25, %v711_v41  ;;  %v686_v27 = vsel %vm614_vm7, %v1694_v44, 0.0  ;;  %v773_v50 = vadd.f32 %v772_v35, %v682_v17  ;;  %v712_v49 = vsel %vm621_vm14, %v2263_v7, 0.0 }
  0xd8   : > { %v749_v18 = vadd.f32 %v748_v23, %v704_v22  ;;  %v761_v61 = vadd.f32 %v760_v4, %v693_v14  ;;  %v701_v53 = vsel %vm618_vm11, %v1754_v58, 0.0  ;;  %v690_v12 = vsel %vm615_vm8, %v1710_v55, 0.0  ;;  %v2274_v22 = vld [vmem:[#allocation37_spill] sm:$0xff]  ;;  %v722_v4 = vld [vmem:[%s1368_s21 + $0x18] sm:$0xff] }
  0xd9   : > { %v737_v10 = vadd.f32 %v736_v56, %v715_v31  ;;  %v774_v43 = vadd.f32 %v773_v50, %v686_v27  ;;  %v716_v32 = vsel %vm622_vm15, %v2264_v2, 0.0  ;;  %v705_v46 = vsel %vm619_vm12, %v2265_v8, 0.0  ;;  %v2275_v31 = vld [vmem:[#allocation41_spill] sm:$0xff] }
  0xda   : > { %v750_v44 = vadd.f32 %v749_v18, %v708_v63  ;;  %v762_v3 = vadd.f32 %v761_v61, %v697_v1  ;;  %v694_v58 = vsel %vm616_vm9, %v2266_v52, 0.0  ;;  %v709_v34 = vsel %vm620_vm13, %v2267_v21, 0.0 }
  0xdb   : > { %v783_v5 = vadd.f32 %v737_v10, %v719_v15  ;;  %v775_v55 = vadd.f32 %v774_v43, %v690_v12  ;;  %v698_v42 = vsel %vm617_vm10, %v2268_v40, 0.0  ;;  %v713_v57 = vsel %vm621_vm14, %v2269_v54, 0.0 }
  0xdc   : > { %v751_v59 = vadd.f32 %v750_v44, %v712_v49  ;;  %v763_v9 = vadd.f32 %v762_v3, %v701_v53  ;;  %v702_v28 = vsel %vm618_vm11, %v2270_v20, 0.0  ;;  %v717_v39 = vsel %vm622_vm15, %v2271_v11, 0.0 }
  0xdd   : > { %787 = vst [vmem:[%s1368_s21] sm:$0xff] %v783_v5  ;;  %v776_v26 = vadd.f32 %v775_v55, %v694_v58  ;;  %v706_v33 = vsel %vm619_vm12, %v2272_v36, 0.0  ;;  %v710_v6 = vsel %vm620_vm13, %v2273_v0, 0.0  ;;  %v714_v14 = vsel %vm621_vm14, %v2274_v22, 0.0 }
  0xde   : > { %v752_v16 = vadd.f32 %v751_v59, %v716_v32  ;;  %v764_v37 = vadd.f32 %v763_v9, %v705_v46  ;;  %v718_v48 = vsel %vm622_vm15, %v2275_v31, 0.0 }
  0xdf   : > { %v777_v47 = vadd.f32 %v776_v26, %v698_v42 }
  0xe0   : > { %v784_v29 = vadd.f32 %v752_v16, %v720_v19  ;;  %v765_v45 = vadd.f32 %v764_v37, %v709_v34 }
  0xe1   : > { %v778_v41 = vadd.f32 %v777_v47, %v702_v28 }
  0xe2   : > { %788 = vst [vmem:[%s1368_s21 + $0x8] sm:$0xff] %v784_v29  ;;  %v766_v30 = vadd.f32 %v765_v45, %v713_v57 }
  0xe3   : > { %v779_v25 = vadd.f32 %v778_v41, %v706_v33 }
  0xe4   : > { %v767_v60 = vadd.f32 %v766_v30, %v717_v39 }
  0xe5   : > { %v780_v38 = vadd.f32 %v779_v25, %v710_v6 }
  0xe6   : > { %v785_v17 = vadd.f32 %v767_v60, %v721_v51 }
  0xe7   : > { %v781_v23 = vadd.f32 %v780_v38, %v714_v14 }
  0xe8   : > { %789 = vst [vmem:[%s1368_s21 + $0x10] sm:$0xff] %v785_v17 }
  0xe9   : > { %v782_v35 = vadd.f32 %v781_v23, %v718_v48 }
  0xeb   : > { %v786_v56 = vadd.f32 %v782_v35, %v722_v4 }
  0xed   : > { %790 = vst [vmem:[%s1368_s21 + $0x18] sm:$0xff] %v786_v56 }
  0xee PF: > { %s937_s28 = sshll.u32 %s1146_s12, 9  ;;  %s806_s26 = sshll.u32 %s1368_s21, 4  ;;  %s807_s26 = int_to_ptr.vmem [resolvable:$true] %s806_s26 }
  0xef   : > { %s2118_s15 = scalar_lea.hbm %s2164_s2, %s937_s28  ;;  %s792_s16 = scalar_lea.sflag [#allocation4], %s1345_s4 }
  0xf0   : > { %s1068_s20 = scalar_lea.vmem %s807_s26, 512  ;;  %p2276_p13 = scmp.ne.s32.totalorder %s2176_s22, 0 }
  0xf1   : > { %p1069_p12 = scmp.ne.s32.totalorder %s807_s26, %s1068_s20  ;;  %s1161_s27 = smov [#allocation7]  }
  0xf2   : > { %s1072_s6 = sshll.u32 %s1161_s27, 4  ;;  %s1073_s6 = int_to_ptr.vmem [resolvable:$false] %s1072_s6 }
  0xf3   : > { %p1070_p7 = pnand %p1069_p12, %p2276_p13  ;;  %s1074_s29 = scalar_lea.vmem %s1073_s6, 1024 }
  0xf4   : > { %p1075_p9 = scmp.lt.s32.totalorder %s807_s26, %s1073_s6  ;;  %p1076_p11 = scmp.lt.s32.totalorder %s1074_s29, %s1068_s20 }
  0xf5   : > { %p1071_p10 = pneg %p1070_p7 }
  0xf6   : > { %p1077_p1 = por %p1076_p11, %p1075_p9 }
  0xf8   : > { %p1078_p6 = pnand %p1077_p1, %p1071_p10 }
  0xfa   : > { %1081 = shalt.err (!%p1078_p6)
}
  0xfb   : > { %s1082_s12 = scalar_lea.hbm %s2118_s15, 512  ;;  %s1086_s25 = scalar_lea.hbm %s2164_s2, 1024 }
  0xfc   : > { %p1083_p2 = scmp.ne.s32.totalorder %s2118_s15, %s1082_s12  ;;  %p1087_p8 = scmp.lt.u32.totalorder %s2118_s15, %s2164_s2 }
  0xfd   : > { %p1088_p0 = scmp.lt.u32.totalorder %s1086_s25, %s1082_s12  ;;  %p1090_p12 = scmp.lt.u32.totalorder %s1082_s12, %s2118_s15 }
  0xfe   : > { %p1084_p5 = pnand %p1083_p2, %p2276_p13 }
  0xff   : > { %p1089_p3 = por %p1088_p0, %p1087_p8 }
 0x100   : > { %p1085_p4 = pneg %p1084_p5 }
 0x101   : > { %p1091_p7 = por %p1090_p12, %p1089_p3 }
 0x103   : > { %p1092_p10 = pnand %p1091_p7, %p1085_p4 }
 0x105   : > { %1095 = shalt.err (!%p1092_p10)
}
 0x106   : > { %942 = dma.vmem_to_hbm [thread:$0]  (%p2276_p13), %s807_s26, 512, %s2118_s15, %s792_s16  }
 0x107 PF: > { %s818_s18 = sand.u32 1, %s1134_s9   ;;  %p2277_p9 = scmp.ne.s32.totalorder %s2177_s24, 0 }
 0x108   : > { %p2278_p11 = scmp.ge.s32.totalorder %s1154_s14, 2  ;;  %s819_s19 = scalar_lea.sflag [#allocation4], %s818_s18 }
 0x10a   : > { %p952_p1 = pnand %p2278_p11, %p2277_p9 }
 0x10c   : > { %1129 = dma.done.wait (!%p952_p1), %s819_s19, 512  }
 0x10d   : > { %1131 = vsyncadd (!%p952_p1), %s819_s19, 4294966784  ;;  %s21_s14 = sadd.s32 1, %s1154_s14   ;;  %s2279_s9 = smov %s1138_s10 }
 0x10e   : > { %p18_p6 = scmp.ge.s32.totalorder %s21_s14, 4   ;;  %s2280_s10 = smov %s1142_s11 }
 0x10f   : > { %s2281_s11 = smov %s1233_s23  ;;  %s2282_s12 = smov %s1150_s13 }
 0x110   : > { %s2283_s13 = smov %s2285_s17  ;;  %20 = sbr.rel (!%p18_p6) target bundleno = 8 (0x8), region = 98 }
 0x117   :  { %824 = vsyncpa [#allocation3], 1 }
 0x118   :  { %826 = vsyncpa [#allocation3 + $0x1], 1 }
 0x119   :  { %827 = vsyncpa [#allocation6], 1 }
 0x11a   :  { %829 = vsyncpa [#allocation6 + $0x1], 1 }
 0x11b   :  { %830 = vsyncpa [#allocation4], 1 }
 0x11c   :  { %832 = vsyncpa [#allocation4 + $0x1], 1 }

</bundles_post_ra>
